<compile_context>
chip_gen: v5e
topology: v5e:2x2
jax: 0.10.0
libtpu: 0.0.40
codegen_flags: <defaults>
</compile_context>

<pallas_src>
import functools

import jax
import jax.numpy as jnp
from jax.experimental import pallas as pl
from jax.experimental.pallas import tpu as pltpu


def _round_up(x, m):
    return (x + m - 1) // m * m


def _gather_logits(idx, table_ref, tn, vpad):
    """Embedding lookup as one-hot @ table (MXU-friendly row gather)."""
    vocab_iota = jax.lax.broadcasted_iota(jnp.int32, (tn, vpad), 1)
    one_hot = jnp.where(idx == vocab_iota, 1.0, 0.0)                 # (TN, Vpad) f32
    logits = jnp.dot(one_hot, table_ref[...],
                     preferred_element_type=jnp.float32)             # (TN, Vpad)
    return vocab_iota, logits


def bigram_loss_kernel(idx_ref, tgt_ref, table_ref, logits_ref, rowloss_ref):
    tn, vpad = logits_ref.shape
    idx = idx_ref[...]                                               # (TN, 1) int32
    tgt = tgt_ref[...]                                               # (TN, 1) int32

    vocab_iota, logits = _gather_logits(idx, table_ref, tn, vpad)
    logits_ref[...] = logits

    # Per-row cross entropy: logsumexp(logits) - logits[target].
    # Padded vocab columns hold -1e30 -> exp underflows to exactly 0.
    m = jnp.max(logits, axis=-1, keepdims=True)                      # (TN, 1)
    lse = jnp.log(jnp.sum(jnp.exp(logits - m), axis=-1,
                          keepdims=True)) + m                        # (TN, 1)
    correct = jnp.sum(jnp.where(tgt == vocab_iota, logits, 0.0),
                      axis=-1, keepdims=True)                        # (TN, 1)
    rowloss_ref[...] = lse - correct                                 # (TN, 1)


def bigram_logits_kernel(idx_ref, table_ref, logits_ref):
    tn, vpad = logits_ref.shape
    _, logits = _gather_logits(idx_ref[...], table_ref, tn, vpad)
    logits_ref[...] = logits


@functools.partial(jax.jit, static_argnames=("tn_max",))
def bigram_forward(idx, targets, table, *, tn_max=256):
    """idx: (B, T) int32; targets: (B, T) int32 or None; table: (V, V) f32.
    Returns (logits, loss). Matches PyTorch: logits is (B*T, V) when targets
    are given (the view used for the loss), else (B, T, V); loss is a scalar
    or None."""
    B, T = idx.shape
    V = table.shape[0]
    N = B * T

    Vpad = _round_up(V, 128)                        # lane-dense logits / MXU tiles
    TN = min(_round_up(tn_max, 8), _round_up(N, 8)) # sublane-aligned row tile
    Npad = _round_up(N, TN)
    num_tiles = Npad // TN
    has_targets = targets is not None

    # Pad table: extra rows are zeros (never selected); on the loss path,
    # extra columns get a large negative so they drop out of the logsumexp.
    table_pad = jnp.pad(table.astype(jnp.float32),
                        ((0, Vpad - V), (0, Vpad - V)))
    if has_targets and Vpad > V:
        table_pad = table_pad.at[:, V:].set(jnp.float32(-1e30))

    idx_flat = jnp.pad(idx.reshape(-1).astype(jnp.int32),
                       (0, Npad - N)).reshape(Npad, 1)

    # Explicit VMEM budget: resident table + double-buffered row/logits tiles.
    vmem_bytes = (2 * Vpad * Vpad * 4          # table (worst case double-buffered)
                  + 2 * TN * Vpad * 4          # logits tile, double-buffered
                  + 2 * TN * 4 * 3)            # idx / tgt / rowloss tiles
    vmem_limit = int(min(32 * 1024 * 1024,
                         max(4 * 1024 * 1024, 4 * vmem_bytes)))
    cparams = pltpu.CompilerParams(
        dimension_semantics=("parallel",), vmem_limit_bytes=vmem_limit)

    row_spec = pl.BlockSpec((TN, 1), lambda i: (i, 0))
    table_spec = pl.BlockSpec((Vpad, Vpad), lambda i: (0, 0))     # resident
    logits_spec = pl.BlockSpec((TN, Vpad), lambda i: (i, 0))      # lane-dense

    if has_targets:
        tgt_flat = jnp.pad(targets.reshape(-1).astype(jnp.int32),
                           (0, Npad - N)).reshape(Npad, 1)
        logits_pad, rowloss = pl.pallas_call(
            bigram_loss_kernel,
            out_shape=(
                jax.ShapeDtypeStruct((Npad, Vpad), jnp.float32),
                jax.ShapeDtypeStruct((Npad, 1), jnp.float32),
            ),
            grid_spec=pltpu.PrefetchScalarGridSpec(
                num_scalar_prefetch=0,
                grid=(num_tiles,),
                in_specs=[row_spec, row_spec, table_spec],
                out_specs=[logits_spec, row_spec],
            ),
            compiler_params=cparams,
        )(idx_flat, tgt_flat, table_pad)
        logits_flat = logits_pad[:N, :V]
        loss = jnp.sum(rowloss[:N, 0]) / jnp.float32(N)
        return logits_flat, loss                      # (B*T, V), scalar

    logits_pad = pl.pallas_call(
        bigram_logits_kernel,
        out_shape=jax.ShapeDtypeStruct((Npad, Vpad), jnp.float32),
        grid_spec=pltpu.PrefetchScalarGridSpec(
            num_scalar_prefetch=0,
            grid=(num_tiles,),
            in_specs=[row_spec, table_spec],
            out_specs=logits_spec,
        ),
        compiler_params=cparams,
    )(idx_flat, table_pad)
    return logits_pad[:N, :V].reshape(B, T, V), None  # (B, T, V), None


# TODO(synk): `generate()` (autoregressive multinomial sampling loop) is host-side
# control flow, not a kernel hot path; only the forward pass is implemented here.


if __name__ == "__main__":
    # Synthetic "text" defines the vocabulary, like in train.py.
    text = "hello pallas tpu bigram language model kernel"
    chars = sorted(list(set(text)))
    vocab_size = len(chars)

    B, T = 2, 8

    key = jax.random.PRNGKey(0)
    k_table, k_idx, k_tgt = jax.random.split(key, 3)

    # nn.Embedding default init: N(0, 1).
    table = jax.random.normal(k_table, (vocab_size, vocab_size), dtype=jnp.float32)
    idx = jax.random.randint(k_idx, (B, T), 0, vocab_size, dtype=jnp.int32)
    targets = jax.random.randint(k_tgt, (B, T), 0, vocab_size, dtype=jnp.int32)

    logits, loss = bigram_forward(idx, targets, table)
    jax.block_until_ready((logits, loss))

    # Sanity check against a pure-JAX reference.
    ref_flat = table[idx].reshape(B * T, vocab_size)
    ref_lse = jax.nn.logsumexp(ref_flat, axis=-1)
    ref_correct = ref_flat[jnp.arange(B * T), targets.reshape(-1)]
    ref_loss = jnp.mean(ref_lse - ref_correct)

    assert logits.shape == (B * T, vocab_size)
    assert jnp.allclose(logits, ref_flat, atol=1e-5), "logits mismatch"
    assert jnp.allclose(loss, ref_loss, atol=1e-5), "loss mismatch"

    # No-targets path (matches PyTorch: logits (B, T, V), loss None).
    logits_nt, loss_nt = bigram_forward(idx, None, table)
    jax.block_until_ready(logits_nt)
    assert logits_nt.shape == (B, T, vocab_size) and loss_nt is None
    assert jnp.allclose(logits_nt, table[idx], atol=1e-5), "no-target logits mismatch"

    print("KERNEL_OK")
</pallas_src>

<mosaic_0001>
module attributes {stable_mosaic.version = 11 : i64} {
  func.func @bigram_loss_kernel(%arg0: i32, %arg1: memref<16x1xi32, #tpu.memory_space<vmem>>, %arg2: memref<16x1xi32, #tpu.memory_space<vmem>>, %arg3: memref<128x128xf32, #tpu.memory_space<vmem>>, %arg4: memref<16x128xf32, #tpu.memory_space<vmem>>, %arg5: memref<16x1xf32, #tpu.memory_space<vmem>>) attributes {dimension_semantics = [#tpu.dimension_semantics<parallel>], iteration_bounds = array<i64: 1>, scalar_prefetch = 0 : i64, scratch_operands = 0 : i64, tpu.core_type = #tpu.core_type<tc>, window_params = [{transform_indices = @transform_0, window_bounds = array<i64: 16, 1>}, {transform_indices = @transform_1, window_bounds = array<i64: 16, 1>}, {pipeline_mode = #tpu.pipeline_mode<synchronous>, transform_indices = @transform_2, window_bounds = array<i64: 128, 128>}, {transform_indices = @transform_3, window_bounds = array<i64: 16, 128>}, {transform_indices = @transform_4, window_bounds = array<i64: 16, 1>}]} {
    %c0 = arith.constant 0 : index
    %c0_0 = arith.constant 0 : index
    %0 = vector.load %arg1[%c0, %c0_0] : memref<16x1xi32, #tpu.memory_space<vmem>>, vector<16x1xi32>
    %c0_1 = arith.constant 0 : index
    %c0_2 = arith.constant 0 : index
    %1 = vector.load %arg2[%c0_1, %c0_2] : memref<16x1xi32, #tpu.memory_space<vmem>>, vector<16x1xi32>
    %2 = tpu.iota {dimensions = array<i32: 1>} : vector<16x128xi32>
    %3 = vector.broadcast %0 : vector<16x1xi32> to vector<16x128xi32>
    %4 = arith.cmpi eq, %3, %2 : vector<16x128xi32>
    %cst = arith.constant 1.000000e+00 : f32
    %cst_3 = arith.constant 0.000000e+00 : f32
    %5 = vector.broadcast %cst : f32 to vector<16x128xf32>
    %6 = vector.broadcast %cst_3 : f32 to vector<16x128xf32>
    %7 = arith.select %4, %5, %6 : vector<16x128xi1>, vector<16x128xf32>
    %c0_4 = arith.constant 0 : index
    %c0_5 = arith.constant 0 : index
    %8 = vector.load %arg3[%c0_4, %c0_5] : memref<128x128xf32, #tpu.memory_space<vmem>>, vector<128x128xf32>
    %cst_6 = arith.constant dense<0.000000e+00> : vector<16x128xf32>
    %9 = tpu.matmul %7, %8, %cst_6 {dimension_numbers = #tpu.dot_dimension_numbers<[1], [0], [0], [1], [0, 0, 1, 1], [], []>} : vector<16x128xf32>, vector<128x128xf32>, vector<16x128xf32> -> vector<16x128xf32>
    %c0_7 = arith.constant 0 : index
    %c0_8 = arith.constant 0 : index
    %10 = vector.load %arg4[%c0_7, %c0_8] : memref<16x128xf32, #tpu.memory_space<vmem>>, vector<16x128xf32>
    tpu.vector_store %arg4[%c0_7, %c0_8], %9 {strides = array<i32>} : memref<16x128xf32, #tpu.memory_space<vmem>>, vector<16x128xf32>,
    %cst_9 = arith.constant dense<0xFF800000> : vector<16xf32>
    %11 = vector.multi_reduction <maximumf>, %9, %cst_9 [1] : vector<16x128xf32> to vector<16xf32>
    %12 = vector.shape_cast %11 : vector<16xf32> to vector<16x1xf32>
    %13 = vector.broadcast %12 : vector<16x1xf32> to vector<16x128xf32>
    %14 = arith.subf %9, %13 : vector<16x128xf32>
    %15 = math.exp %14 : vector<16x128xf32>
    %cst_10 = arith.constant dense<0.000000e+00> : vector<16xf32>
    %16 = vector.multi_reduction <add>, %15, %cst_10 [1] : vector<16x128xf32> to vector<16xf32>
    %17 = vector.shape_cast %16 : vector<16xf32> to vector<16x1xf32>
    %18 = math.log %17 : vector<16x1xf32>
    %19 = arith.addf %18, %12 : vector<16x1xf32>
    %20 = vector.broadcast %1 : vector<16x1xi32> to vector<16x128xi32>
    %21 = arith.cmpi eq, %20, %2 : vector<16x128xi32>
    %cst_11 = arith.constant 0.000000e+00 : f32
    %22 = vector.broadcast %cst_11 : f32 to vector<16x128xf32>
    %23 = arith.select %21, %9, %22 : vector<16x128xi1>, vector<16x128xf32>
    %cst_12 = arith.constant dense<0.000000e+00> : vector<16xf32>
    %24 = vector.multi_reduction <add>, %23, %cst_12 [1] : vector<16x128xf32> to vector<16xf32>
    %25 = vector.shape_cast %24 : vector<16xf32> to vector<16x1xf32>
    %26 = arith.subf %19, %25 : vector<16x1xf32>
    %c0_13 = arith.constant 0 : index
    %c0_14 = arith.constant 0 : index
    %27 = vector.load %arg5[%c0_13, %c0_14] : memref<16x1xf32, #tpu.memory_space<vmem>>, vector<16x1xf32>
    tpu.vector_store %arg5[%c0_13, %c0_14], %26 {strides = array<i32>} : memref<16x1xf32, #tpu.memory_space<vmem>>, vector<16x1xf32>,
    return
  }
  func.func @transform_0(%arg0: i32) -> (i32, i32) {
    %c0_i32 = arith.constant 0 : i32
    %c0_i32_0 = arith.constant 0 : i32
    return %arg0, %c0_i32 : i32, i32
  }
  func.func @transform_1(%arg0: i32) -> (i32, i32) {
    %c0_i32 = arith.constant 0 : i32
    %c0_i32_0 = arith.constant 0 : i32
    return %arg0, %c0_i32 : i32, i32
  }
  func.func @transform_2(%arg0: i32) -> (i32, i32) {
    %c0_i32 = arith.constant 0 : i32
    %c0_i32_0 = arith.constant 0 : i32
    %c0_i32_1 = arith.constant 0 : i32
    return %c0_i32, %c0_i32_0 : i32, i32
  }
  func.func @transform_3(%arg0: i32) -> (i32, i32) {
    %c0_i32 = arith.constant 0 : i32
    %c0_i32_0 = arith.constant 0 : i32
    return %arg0, %c0_i32 : i32, i32
  }
  func.func @transform_4(%arg0: i32) -> (i32, i32) {
    %c0_i32 = arith.constant 0 : i32
    %c0_i32_0 = arith.constant 0 : i32
    return %arg0, %c0_i32 : i32, i32
  }
}

</mosaic_0001>

<bundles_post_ra>
// kernel: bigram_forward.1
= control target key start
LH: loop header
LB: loop body
LE: loop exit
PB: predicated region body
PF: predicated region fallthrough
CT: control target
= control target key end

     0   :  { %v194_v2 = vmov 0   ;;  %s293_s0 = inlined_call_operand.vmem [shape: s32[16,1], index: 0, kind: input, shape index: {}]   ;;  %s294_s1 = inlined_call_operand.vmem [shape: s32[16,1], index: 1, kind: input, shape index: {}]   ;;  %s295_s2 = inlined_call_operand.vmem [shape: f32[128,128], index: 2, kind: input, shape index: {}]   ;;  %s296_s3 = inlined_call_operand.hbm [shape: f32[16,128], index: 3, kind: output, shape index: {0}]   ;;  %s297_s4 = inlined_call_operand.vmem [shape: f32[16,1], index: 4, kind: output, shape index: {1}]  }
   0x1   :  { %v17_v0 = vld [vmem:[%s293_s0] sm:$0xff]  ;;  %v48_v1 = vld [vmem:[%s295_s2 + $0x78] sm:$0xff]  ;;  %158 = vset.pattern.permute.xlu0 %v194_v2  ;;  %v47_v3 = vld [vmem:[%s295_s2 + $0x70] sm:$0xff]  ;;  %159 = vset.pattern.permute.xlu2 %v194_v2 }
   0x2   :  { %49 = vmatpush.msra.mxu0 %v48_v1  ;;  %24 = vperm.xlu0 %158, %v17_v0   ;;  %v46_v4 = vld [vmem:[%s295_s2 + $0x68] sm:$0xff]  ;;  %v45_v5 = vld [vmem:[%s295_s2 + $0x60] sm:$0xff] }
   0x3   :  { %137 = vmatpush.msra.mxu1 %v48_v1 }
   0x4   :  { %50 = vmatpush.msra.mxu0 %v47_v3 }
   0x5   :  { %138 = vmatpush.msra.mxu1 %v47_v3 }
   0x6   :  { %51 = vmatpush.msra.mxu0 %v46_v4 }
   0x7   :  { %10 = vsyncpa [#allocation3], 0  ;;  %v44_v6 = vld [vmem:[%s295_s2 + $0x58] sm:$0xff]  ;;  %139 = vmatpush.msra.mxu1 %v46_v4  ;;  %v18_v7 = vld [vmem:[%s293_s0 + $0x8] sm:$0xff]  ;;  %v21_v21 = vlaneseq  ;;  %v195_v24 = vmov 1.0   ;;  %s119_s30 = sshll.u32 %s296_s3, 4  ;;  %s120_s30 = int_to_ptr.hbm [resolvable:$true] %s119_s30 }
   0x8   :  { %52 = vmatpush.msra.mxu0 %v45_v5  ;;  %v43_v8 = vld [vmem:[%s295_s2 + $0x50] sm:$0xff]  ;;  %v42_v9 = vld [vmem:[%s295_s2 + $0x48] sm:$0xff]  ;;  %v41_v10 = vld [vmem:[%s295_s2 + $0x40] sm:$0xff]  ;;  %s197_s5 = smov 128   ;;  %s198_s6 = smov 8   ;;  %vm110_vm4 = vcmask 7168  }
   0x9   :  { %140 = vmatpush.msra.mxu1 %v45_v5  ;;  %v40_v11 = vld [vmem:[%s295_s2 + $0x38] sm:$0xff]  ;;  %v39_v12 = vld [vmem:[%s295_s2 + $0x30] sm:$0xff]  ;;  %v38_v13 = vld [vmem:[%s295_s2 + $0x28] sm:$0xff]  ;;  %v22_v22 = vand.u32 127, %v21_v21 }
   0xa   :  { %53 = vmatpush.msra.mxu0 %v44_v6  ;;  %27 = vperm.xlu0 %158, %v18_v7   ;;  %v37_v14 = vld [vmem:[%s295_s2 + $0x20] sm:$0xff]  ;;  %v36_v15 = vld [vmem:[%s295_s2 + $0x18] sm:$0xff]  ;;  %v35_v16 = vld [vmem:[%s295_s2 + $0x10] sm:$0xff] }
   0xb   :  { %141 = vmatpush.msra.mxu1 %v44_v6  ;;  %v34_v17 = vld [vmem:[%s295_s2 + $0x8] sm:$0xff]  ;;  %v33_v18 = vld [vmem:[%s295_s2] sm:$0xff] }
   0xc   :  { %54 = vmatpush.msra.mxu0 %v43_v8  ;;  %v19_v19 = vld [vmem:[%s294_s1] sm:$0xff]  ;;  %v20_v20 = vld [vmem:[%s294_s1 + $0x8] sm:$0xff]  ;;  %s196_s1 = smov [#allocation2]  }
   0xd   :  { %142 = vmatpush.msra.mxu1 %v43_v8  ;;  %95 = vperm.xlu2 %159, %v19_v19   ;;  %s117_s2 = sshll.u32 %s196_s1, 4  ;;  %s118_s2 = int_to_ptr.vmem [resolvable:$true] %s117_s2 }
   0xe   :  { %55 = vmatpush.msra.mxu0 %v42_v9 }
   0xf   :  { %143 = vmatpush.msra.mxu1 %v42_v9 }
  0x10   :  { %56 = vmatpush.msra.mxu0 %v41_v10 }
  0x11   :  { %144 = vmatpush.msra.mxu1 %v41_v10 }
  0x12   :  { %57 = vmatpush.msra.mxu0 %v40_v11 }
  0x13   :  { %145 = vmatpush.msra.mxu1 %v40_v11 }
  0x14   :  { %58 = vmatpush.msra.mxu0 %v39_v12 }
  0x15   :  { %146 = vmatpush.msra.mxu1 %v39_v12  ;;  %98 = vperm.xlu2 %159, %v20_v20  }
  0x16   :  { %59 = vmatpush.msra.mxu0 %v38_v13 }
  0x17   :  { %147 = vmatpush.msra.mxu1 %v38_v13 }
  0x18   :  { %60 = vmatpush.msra.mxu0 %v37_v14 }
  0x19   :  { %148 = vmatpush.msra.mxu1 %v37_v14 }
  0x1a   :  { %61 = vmatpush.msra.mxu0 %v36_v15 }
  0x1b   :  { %149 = vmatpush.msra.mxu1 %v36_v15 }
  0x1c   :  { %62 = vmatpush.msra.mxu0 %v35_v16 }
  0x1d   :  { %150 = vmatpush.msra.mxu1 %v35_v16 }
  0x1e   :  { %63 = vmatpush.msra.mxu0 %v34_v17 }
  0x1f   :  { %151 = vmatpush.msra.mxu1 %v34_v17 }
  0x20   :  { %64 = vmatpush.msra.mxu0 %v33_v18 }
  0x21   :  { %152 = vmatpush.msra.mxu1 %v33_v18 }
  0x67   :  { %v96_v26 = vpop.permute.xlu2 %95 }
  0x68   :  { %vm100_vm2 = vcmp.eq.s32.totalorder %v96_v26, %v22_v22 }
  0x6f   :  { %v99_v38 = vpop.permute.xlu2 %98 }
  0x70   :  { %vm101_vm3 = vcmp.eq.s32.totalorder %v99_v38, %v22_v22 }
  0x74   :  { %v25_v23 = vpop.permute.xlu0 %24 }
  0x75   :  { %vm29_vm0 = vcmp.eq.s32.totalorder %v25_v23, %v22_v22 }
  0x76   :  { %135 = vmatmul.msk.f32.vlgmr.msra.gmra.mxu0 %vm29_vm0, %v195_v24 }
  0x7c   :  { %v28_v25 = vpop.permute.xlu0 %27 }
  0x7d   :  { %vm30_vm1 = vcmp.eq.s32.totalorder %v28_v25, %v22_v22 }
  0x7e   :  { %136 = vmatmul.msk.f32.vlgmr.msra.gmra.mxu1 %vm30_vm1, %v195_v24 }
  0xf3   :  { %v66_v27 = vpop.f32.mrf.mxu0 }
  0xf4   :  { %72 = vst [vmem:[#allocation2] sm:$0xff] %v66_v27  ;;  %74 = vmax.xlane.f32.xlu1 %v66_v27  ;;  %v102_v28 = vsel %vm100_vm2, %v66_v27, 0.0 }
  0xf5   :  { %104 = vadd.xlane.f32.xlu2 %v102_v28 }
  0xfb   :  { %v69_v29 = vpop.f32.mrf.mxu1 }
  0xfc   :  { %73 = vst [vmem:[#allocation2 + $0x8] sm:$0xff] %v69_v29  ;;  %76 = vmax.xlane.f32.xlu1 %v69_v29  ;;  %v103_v39 = vsel %vm101_vm3, %v69_v29, 0.0 }
  0xfd   :  { %125 = dma.vmem_to_hbm [thread:$0]  %s118_s2, 256, %s120_s30, [#allocation3], %s197_s5, %s197_s5, %s198_s6  }
 0x167   :  { %v75_v30 = vpop.xlane.xlu1 %74 }
 0x168   :  { %v78_v31 = vsub.f32 %v66_v27, %v75_v30  ;;  %v105_v45 = vpop.xlane.xlu2 %104 }
 0x16a   :  { %v80_v32 = vmul.f32 1.442695, %v78_v31 }
 0x16c   :  { %160 = vpow2.f32 %v80_v32 }
 0x16f   :  { %v77_v33 = vpop.xlane.xlu1 %76 }
 0x170   :  { %v79_v34 = vsub.f32 %v69_v29, %v77_v33 }
 0x172   :  { %v161_v35 = vpop.eup %160  ;;  %v82_v36 = vmul.f32 1.442695, %v79_v34 }
 0x173   :  { %84 = vadd.xlane.f32.xlu0 %v161_v35 }
 0x174   :  { %162 = vpow2.f32 %v82_v36 }
 0x17a   :  { %v163_v37 = vpop.eup %162 }
 0x17b   :  { %86 = vadd.xlane.f32.xlu1 %v163_v37 }
 0x183   :  { %106 = vadd.xlane.f32.xlu1 %v103_v39 }
 0x1e6   :  { %v85_v40 = vpop.xlane.xlu0 %84 }
 0x1e7   :  { %164 = vlog2.f32 %v85_v40 }
 0x1ed   :  { %v165_v41 = vpop.eup %164 }
 0x1ee   :  { %v89_v42 = vmul.f32 0.6931472, %v165_v41  ;;  %v87_v43 = vpop.xlane.xlu1 %86 }
 0x1ef   :  { %166 = vlog2.f32 %v87_v43 }
 0x1f0   :  { %v92_v44 = vadd.f32 %v89_v42, %v75_v30 }
 0x1f2   :  { %v108_v46 = vsub.f32 %v92_v44, %v105_v45 }
 0x1f4   :  { %111 = vst.msk [vmem:[%s297_s4] sm:$0xff] %vm110_vm4, %v108_v46 }
 0x1f5   :  { %v167_v47 = vpop.eup %166 }
 0x1f6   :  { %v91_v48 = vmul.f32 0.6931472, %v167_v47  ;;  %v107_v50 = vpop.xlane.xlu1 %106 }
 0x1f8   :  { %v93_v49 = vadd.f32 %v91_v48, %v77_v33 }
 0x1fa   :  { %v109_v51 = vsub.f32 %v93_v49, %v107_v50 }
 0x1fc   :  { %112 = vst.msk [vmem:[%s297_s4 + $0x8] sm:$0xff] %vm110_vm4, %v109_v51 }
 0x1fd   :  { %192 = dma.done.wait [#allocation3], 256  }
 0x1fe   :  { %193 = vsyncadd [#allocation3], 4294967040 }
 0x1ff   :  { %134 = vsyncpa [#allocation3], 1 }

</bundles_post_ra>
